<compile_context>
chip_gen: v7x
topology: tpu7x:2x2x1
jax: 0.10.0
libtpu: 0.0.40
codegen_flags: <defaults>
</compile_context>

<pallas_src>
import math

import jax
import jax.numpy as jnp
from jax.experimental import pallas as pl
from jax.experimental.pallas import tpu as pltpu


def _round_up(x: int, m: int) -> int:
    return ((x + m - 1) // m) * m


# ----------------------------------------------------------------------------
# CPG table construction (pure JAX glue; matches the PyTorch CPG dataclass).
# ----------------------------------------------------------------------------
def make_cpg_table(num_neurons: int = 10, w_max: float = 10000.0, l_max: int = 5000):
    position = jnp.arange(l_max, dtype=jnp.float32)[:, None]              # (l_max, 1)
    div_term = jnp.exp(
        jnp.arange(0, num_neurons, 2, dtype=jnp.float32)
        * (-math.log(w_max) / num_neurons)
    )
    div_term_single = jnp.exp(
        jnp.arange(0, num_neurons - 1, 2, dtype=jnp.float32)
        * (-math.log(w_max) / num_neurons)
    )

    # torch.heaviside(v, 1.0): v < 0 -> 0 ; v == 0 -> 1 ; v > 0 -> 1  ==  (v >= 0)
    def heaviside1(v):
        return (v >= 0.0).astype(jnp.float32)

    even = heaviside1(jnp.sin(position * div_term) - 0.8)          # columns 0::2
    odd = heaviside1(jnp.cos(position * div_term_single) - 0.8)    # columns 1::2

    cpg = jnp.zeros((l_max, num_neurons), dtype=jnp.float32)
    cpg = cpg.at[:, 0::2].set(even)
    cpg = cpg.at[:, 1::2].set(odd)
    return cpg


# ----------------------------------------------------------------------------
# Pallas kernel: tiled GEMM   out = x @ Wi^T  (+ precomputed CPG+bias term).
# ----------------------------------------------------------------------------
def _cpg_gemm_kernel(x_ref, w_ref, add_ref, o_ref, acc_ref):
    # x_ref:   (tl, tk)  slice of one batch element's rows (batch dim squeezed)
    # w_ref:   (tk, tn)  slice of Wi^T
    # add_ref: (tl, tn)  precomputed (cpg @ Wc^T + bi + bc) tile, f32
    # o_ref:   (tl, tn)  output tile (batch dim squeezed)
    # acc_ref: (tl, tn)  f32 accumulator scratch
    k = pl.program_id(3)

    @pl.when(k == 0)
    def _init():
        # Seed accumulator with the hoisted constant term: the epilogue then is a
        # single cast + lane-dense store (no extra broadcast adds per tile).
        acc_ref[...] = add_ref[...]

    acc_ref[...] += jnp.dot(
        x_ref[...], w_ref[...], preferred_element_type=jnp.float32
    )

    @pl.when(k == pl.num_programs(3) - 1)
    def _finalize():
        o_ref[...] = acc_ref[...].astype(o_ref.dtype)


# ----------------------------------------------------------------------------
# Wrapper: padding, tiling, constant-term hoisting, pallas_call.
# ----------------------------------------------------------------------------
def cpg_linear_forward(
    x,              # (B, L, In)
    cpg_table,      # (l_max, num_neurons), fixed 0/1 spikes
    wi_t,           # (In, Out)   inp_linear weight, pre-transposed
    bi,             # (Out,)      inp_linear bias
    wc_t,           # (N, Out)    cpg_linear weight, pre-transposed
    bc,             # (Out,)      cpg_linear bias
    *,
    compute_dtype=jnp.float32,   # set to jnp.bfloat16 to feed the MXU at bf16 rate
    tile_l: int = 256,
    tile_n: int = 256,
    tile_k: int = 512,
):
    B, L, In = x.shape
    In_w, Out = wi_t.shape
    assert In_w == In
    cpg_slice = cpg_table[:L]                                        # (L, N)

    # Hoisted constant term (computed once, not B times inside the grid):
    #   add_term = cpg @ Wc^T + bc + bi      -> tiny (L, Out) f32 array.
    add_term = (
        jnp.dot(cpg_slice, wc_t, preferred_element_type=jnp.float32)
        + bc.reshape(1, -1)
        + bi.reshape(1, -1)
    ).astype(jnp.float32)

    # ---- tile sizes: sublane-multiple rows, lane-multiple (128) feature dims ----
    tl = min(tile_l, _round_up(L, 8))
    tn = min(tile_n, _round_up(Out, 128))
    tk = min(tile_k, _round_up(In, 128))
    Lp = _round_up(L, tl)
    Np = _round_up(Out, tn)
    Kp = _round_up(In, tk)

    # ---- zero-pad to tile multiples (padding contributes exact zeros) ----
    x_p = jnp.zeros((B, Lp, Kp), compute_dtype).at[:, :L, :In].set(
        x.astype(compute_dtype)
    )
    w_p = jnp.zeros((Kp, Np), compute_dtype).at[:In, :Out].set(
        wi_t.astype(compute_dtype)
    )
    add_p = jnp.zeros((Lp, Np), jnp.float32).at[:L, :Out].set(add_term)

    grid = (B, Lp // tl, Np // tn, Kp // tk)

    # ---- VMEM budget (double-buffered inputs/outputs + accumulator) ----
    itemsize = jnp.dtype(compute_dtype).itemsize
    vmem_bytes = (
        2 * (tl * tk + tk * tn) * itemsize   # x tile + Wi tile, double-buffered
        + 2 * tl * tn * 4                    # add-term tile, double-buffered
        + 2 * tl * tn * 4                    # output tile, double-buffered
        + tl * tn * 4                        # f32 accumulator scratch
    )
    vmem_limit = int(min(max(2 * vmem_bytes, 32 * 1024 * 1024), 96 * 1024 * 1024))

    flops = 2 * B * Lp * Kp * Np
    bytes_accessed = int(
        x_p.size * itemsize + w_p.size * itemsize + add_p.size * 4 + B * Lp * Np * 4
    )

    out_padded = pl.pallas_call(
        _cpg_gemm_kernel,
        out_shape=jax.ShapeDtypeStruct((B, Lp, Np), jnp.float32),
        grid_spec=pltpu.PrefetchScalarGridSpec(
            num_scalar_prefetch=0,
            grid=grid,
            in_specs=[
                # x: one (tl, tk) slab of batch element b (batch dim squeezed).
                pl.BlockSpec((pl.Squeezed(), tl, tk), lambda b, l, n, k: (b, l, k)),
                # Wi^T: (tk, tn) tile, shared across batch / L tiles.
                pl.BlockSpec((tk, tn), lambda b, l, n, k: (k, n)),
                # Hoisted CPG+bias term: (tl, tn) tile, shared across batch and K.
                pl.BlockSpec((tl, tn), lambda b, l, n, k: (l, n)),
            ],
            out_specs=pl.BlockSpec(
                (pl.Squeezed(), tl, tn), lambda b, l, n, k: (b, l, n)
            ),
            scratch_shapes=[pltpu.VMEM((tl, tn), jnp.float32)],
        ),
        compiler_params=pltpu.CompilerParams(
            dimension_semantics=("parallel", "parallel", "parallel", "arbitrary"),
            vmem_limit_bytes=vmem_limit,
        ),
        cost_estimate=pl.CostEstimate(
            flops=flops, transcendentals=0, bytes_accessed=bytes_accessed
        ),
    )(x_p, w_p, add_p)

    # Strip padding.
    return out_padded[:, :L, :Out]


# ----------------------------------------------------------------------------
# Pure-JAX reference for a correctness check.
# ----------------------------------------------------------------------------
def cpg_linear_reference(x, cpg_slice, wi_t, bi, wc_t, bc):
    return x @ wi_t + bi[None, None, :] + (cpg_slice @ wc_t + bc[None, :])[None, :, :]


if __name__ == "__main__":
    # Small shapes consistent with the module's forward: x is (B, L, input_size).
    B, L = 2, 8
    input_size, output_size = 16, 32
    num_neurons, w_max, l_max = 10, 10000.0, 5000

    key = jax.random.PRNGKey(0)
    kx, kwi, kbi, kwc, kbc = jax.random.split(key, 5)

    x = jax.random.normal(kx, (B, L, input_size), dtype=jnp.float32)

    # Deterministic parameter init (nn.Linear style: U(-1/sqrt(fan_in), 1/sqrt(fan_in))).
    bound_i = 1.0 / math.sqrt(input_size)
    wi_t = jax.random.uniform(
        kwi, (input_size, output_size), jnp.float32, -bound_i, bound_i
    )
    bi = jax.random.uniform(kbi, (output_size,), jnp.float32, -bound_i, bound_i)

    bound_c = 1.0 / math.sqrt(num_neurons)
    wc_t = jax.random.uniform(
        kwc, (num_neurons, output_size), jnp.float32, -bound_c, bound_c
    )
    bc = jax.random.uniform(kbc, (output_size,), jnp.float32, -bound_c, bound_c)

    # Fixed (non-trainable) CPG table; forward slices it to L (= x.size(-2)).
    cpg_table = make_cpg_table(num_neurons, w_max, l_max)

    out = cpg_linear_forward(x, cpg_table, wi_t, bi, wc_t, bc)
    out = jax.block_until_ready(out)

    ref = cpg_linear_reference(x, cpg_table[:L], wi_t, bi, wc_t, bc)
    assert out.shape == (B, L, output_size)
    assert jnp.allclose(out, ref, atol=1e-5, rtol=1e-5), "mismatch vs reference"

    print("KERNEL_OK")
</pallas_src>

<mosaic_0001>
module attributes {stable_mosaic.version = 11 : i64} {
  func.func @_cpg_gemm_kernel(%arg0: i32, %arg1: i32, %arg2: i32, %arg3: i32, %arg4: memref<1x8x128xf32, #tpu.memory_space<vmem>>, %arg5: memref<128x128xf32, #tpu.memory_space<vmem>>, %arg6: memref<8x128xf32, #tpu.memory_space<vmem>>, %arg7: memref<1x8x128xf32, #tpu.memory_space<vmem>>, %arg8: memref<8x128xf32, #tpu.memory_space<vmem>>) attributes {dimension_semantics = [#tpu.dimension_semantics<parallel>, #tpu.dimension_semantics<parallel>, #tpu.dimension_semantics<parallel>, #tpu.dimension_semantics<arbitrary>], iteration_bounds = array<i64: 2, 1, 1, 1>, scalar_prefetch = 0 : i64, scratch_operands = 1 : i64, tpu.core_type = #tpu.core_type<tc>, window_params = [{transform_indices = @transform_0, window_bounds = array<i64: 1, 8, 128>}, {transform_indices = @transform_1, window_bounds = array<i64: 128, 128>}, {transform_indices = @transform_2, window_bounds = array<i64: 8, 128>}, {transform_indices = @transform_3, window_bounds = array<i64: 1, 8, 128>}]} {
    %c0_i32 = arith.constant 0 : i32
    %0 = arith.cmpi eq, %arg3, %c0_i32 : i32
    %1 = arith.extui %0 : i1 to i32
    %c0_i32_0 = arith.constant 0 : i32
    %2 = arith.cmpi ne, %1, %c0_i32_0 : i32
    scf.if %2 {
      %c0_11 = arith.constant 0 : index
      %c0_12 = arith.constant 0 : index
      %13 = vector.load %arg6[%c0_11, %c0_12] : memref<8x128xf32, #tpu.memory_space<vmem>>, vector<8x128xf32>
      %c0_13 = arith.constant 0 : index
      %c0_14 = arith.constant 0 : index
      %14 = vector.load %arg8[%c0_13, %c0_14] : memref<8x128xf32, #tpu.memory_space<vmem>>, vector<8x128xf32>
      tpu.vector_store %arg8[%c0_13, %c0_14], %13 {strides = array<i32>} : memref<8x128xf32, #tpu.memory_space<vmem>>, vector<8x128xf32>,
    } else {
    }
    %c0 = arith.constant 0 : index
    %c0_1 = arith.constant 0 : index
    %3 = vector.load %arg8[%c0, %c0_1] : memref<8x128xf32, #tpu.memory_space<vmem>>, vector<8x128xf32>
    %c0_2 = arith.constant 0 : index
    %c0_3 = arith.constant 0 : index
    %c0_4 = arith.constant 0 : index
    %4 = vector.load %arg4[%c0_2, %c0_3, %c0_4] : memref<1x8x128xf32, #tpu.memory_space<vmem>>, vector<1x8x128xf32>
    %5 = vector.shape_cast %4 : vector<1x8x128xf32> to vector<8x128xf32>
    %c0_5 = arith.constant 0 : index
    %c0_6 = arith.constant 0 : index
    %6 = vector.load %arg5[%c0_5, %c0_6] : memref<128x128xf32, #tpu.memory_space<vmem>>, vector<128x128xf32>
    %cst = arith.constant dense<0.000000e+00> : vector<8x128xf32>
    %7 = tpu.matmul %5, %6, %cst {dimension_numbers = #tpu.dot_dimension_numbers<[1], [0], [0], [1], [0, 0, 1, 1], [], []>} : vector<8x128xf32>, vector<128x128xf32>, vector<8x128xf32> -> vector<8x128xf32>
    %8 = arith.addf %3, %7 : vector<8x128xf32>
    %c0_7 = arith.constant 0 : index
    %c0_8 = arith.constant 0 : index
    %9 = vector.load %arg8[%c0_7, %c0_8] : memref<8x128xf32, #tpu.memory_space<vmem>>, vector<8x128xf32>
    tpu.vector_store %arg8[%c0_7, %c0_8], %8 {strides = array<i32>} : memref<8x128xf32, #tpu.memory_space<vmem>>, vector<8x128xf32>,
    %c0_i32_9 = arith.constant 0 : i32
    %10 = arith.cmpi eq, %arg3, %c0_i32_9 : i32
    %11 = arith.extui %10 : i1 to i32
    %c0_i32_10 = arith.constant 0 : i32
    %12 = arith.cmpi ne, %11, %c0_i32_10 : i32
    scf.if %12 {
      %c0_11 = arith.constant 0 : index
      %c0_12 = arith.constant 0 : index
      %13 = vector.load %arg8[%c0_11, %c0_12] : memref<8x128xf32, #tpu.memory_space<vmem>>, vector<8x128xf32>
      %c0_13 = arith.constant 0 : index
      %c0_14 = arith.constant 0 : index
      %c0_15 = arith.constant 0 : index
      %14 = vector.load %arg7[%c0_13, %c0_14, %c0_15] : memref<1x8x128xf32, #tpu.memory_space<vmem>>, vector<1x8x128xf32>
      %15 = vector.shape_cast %14 : vector<1x8x128xf32> to vector<8x128xf32>
      %16 = vector.shape_cast %13 : vector<8x128xf32> to vector<1x8x128xf32>
      tpu.vector_store %arg7[%c0_13, %c0_14, %c0_15], %16 {strides = array<i32>} : memref<1x8x128xf32, #tpu.memory_space<vmem>>, vector<1x8x128xf32>,
    } else {
    }
    return
  }
  func.func @transform_0(%arg0: i32, %arg1: i32, %arg2: i32, %arg3: i32) -> (i32, i32, i32) {
    %c0_i32 = arith.constant 0 : i32
    return %arg0, %arg1, %arg3 : i32, i32, i32
  }
  func.func @transform_1(%arg0: i32, %arg1: i32, %arg2: i32, %arg3: i32) -> (i32, i32) {
    %c0_i32 = arith.constant 0 : i32
    return %arg3, %arg2 : i32, i32
  }
  func.func @transform_2(%arg0: i32, %arg1: i32, %arg2: i32, %arg3: i32) -> (i32, i32) {
    %c0_i32 = arith.constant 0 : i32
    return %arg1, %arg2 : i32, i32
  }
  func.func @transform_3(%arg0: i32, %arg1: i32, %arg2: i32, %arg3: i32) -> (i32, i32, i32) {
    %c0_i32 = arith.constant 0 : i32
    return %arg0, %arg1, %arg2 : i32, i32, i32
  }
}

</mosaic_0001>

<bundles_post_ra>
// kernel: tpu_custom_call.1
= control target key start
LH: loop header
LB: loop body
LE: loop exit
PB: predicated region body
PF: predicated region fallthrough
CT: control target
= control target key end

     0   :  { %8 = vsyncpa [#allocation4], 0  ;;  %s1143_s0 = inlined_call_operand.hbm [shape: f32[2,8,128], index: 0, kind: input, shape index: {}]   ;;  %s1144_s1 = inlined_call_operand.hbm [shape: f32[128,128], index: 1, kind: input, shape index: {}]   ;;  %s1145_s2 = inlined_call_operand.hbm [shape: f32[8,128], index: 2, kind: input, shape index: {}]   ;;  %s1146_s3 = inlined_call_operand.hbm [shape: f32[2,8,128], index: 3, kind: output, shape index: {}]  }
   0x1   :  { %10 = vsyncpa [#allocation4 + $0x1], 0 }
   0x2   :  { %11 = vsyncpa [#allocation7], 0 }
   0x3   :  { %12 = vsyncpa [#allocation5], 0 }
   0x4   :  { %14 = vsyncpa [#allocation5 + $0x1], 0  ;;  %s886_s12 = smov 0   ;;  %s888_s13 = smov 0  }
   0x5   :  { %s890_s14 = smov 0   ;;  %s892_s15 = smov 0  }
   0x6   :  { %s894_s16 = smov 0   ;;  %s896_s17 = smov 0  }
   0x7 LB: > { %s502_s18 = sadd.s32 4294967295, %s855_s17   ;;  %s503_s19 = sadd.s32 4294967294, %s855_s17   ;;  %s855_s17 = sphi %s896_s17, %s20_s17   ;;  %s851_s16 = sphi %s894_s16, %s1168_s16   ;;  %s847_s15 = sphi %s892_s15, %s1167_s15   ;;  %s843_s14 = sphi %s890_s14, %s1166_s14   ;;  %s839_s13 = sphi %s888_s13, %s1165_s13   ;;  %s835_s12 = sphi %s886_s12, %s1164_s12  }
   0x8   : > { %p70_p0 = scmp.ne.s32.totalorder %s839_s13, %s835_s12  ;;  %p920_p1 = scmp.eq.s32.totalorder %s502_s18, 0 }
   0x9   : > { %p924_p2 = scmp.eq.s32.totalorder %s502_s18, 1  ;;  %p160_p3 = scmp.eq.s32.totalorder %s503_s19, 1 }
   0xa   : > { %s1151_s20 = scalar_select %p920_p1, 1, 0 }
   0xb   : > { %p930_p4 = por %p920_p1, %p70_p0  ;;  %p504_p5 = scmp.ge.s32.totalorder %s855_s17, 1 }
   0xc   : > { %p935_p6 = por %p160_p3, %p70_p0  ;;  %p167_p7 = scmp.lt.s32.totalorder %s855_s17, 3 }
   0xd   : > { %s1153_s22 = scalar_select %p930_p4, 1, 0 }
   0xe   : > { %s1154_s23 = scalar_select %p935_p6, 1, 0 }
   0xf   : > { %p940_p8 = pnand %p504_p5, %p167_p7  ;;  %s857_s25 = smov [#allocation6]  }
  0x10   : > { %s183_s26 = sshll.u32 %s857_s25, 4  ;;  %s858_s28 = smov [#allocation8]   ;;  %s944_s26 = int_to_ptr.vmem [resolvable:$true] %s183_s26 }
  0x11   : > { %p607_p9 = pneg %p940_p8  ;;  %s200_s29 = sshll.u32 %s858_s28, 4  ;;  %s955_s29 = int_to_ptr.vmem [resolvable:$true] %s200_s29 }
  0x12   : > { %s683_s5 = scalar_lea.hbm %s1144_s1, 2048 }
  0x13   : > { %p951_p11 = pnand %p607_p9, %p920_p1  ;;  %p684_p12 = scmp.ne.s32.totalorder %s1144_s1, %s683_s5 }
  0x14   : > { %p690_p5 = scmp.lt.u32.totalorder %s683_s5, %s1144_s1 }
  0x15   : > { %p685_p13 = pneg %p951_p11 }
  0x17   : > { %p686_p0 = pnand %p685_p13, %p684_p12 }
  0x19   : > { %p687_p3 = pneg %p686_p0 }
  0x1b   : > { %p692_p7 = pnand %p690_p5, %p687_p3 }
  0x1d   : > { %695 = shalt.err (!%p692_p7)
}
  0x1e   : > { %s696_s10 = scalar_lea.vmem %s944_s26, 2048  ;;  %p704_p1 = scmp.lt.s32.totalorder %s944_s26, %s944_s26 }
  0x1f   : > { %p697_p9 = scmp.ne.s32.totalorder %s944_s26, %s696_s10  ;;  %p705_p12 = scmp.lt.s32.totalorder %s696_s10, %s696_s10 }
  0x21   : > { %p699_p10 = pnand %p697_p9, %p685_p13  ;;  %p706_p0 = por %p705_p12, %p704_p1 }
  0x23   : > { %p700_p6 = pneg %p699_p10 }
  0x25   : > { %p707_p4 = pnand %p706_p0, %p700_p6 }
  0x27   : > { %710 = shalt.err (!%p707_p4)
}
  0x28   : > { %s859_s11 = smov 128   ;;  %s860_s18 = smov 8  }
  0x29   : > { %610 = dma.hbm_to_vmem [thread:$0]  (!%p951_p11), %s1144_s1, 2048, %s944_s26, [#allocation7], %s859_s11, %s859_s11, %s860_s18  }
  0x2a   : > { %s711_s4 = scalar_lea.hbm %s1145_s2, 128 }
  0x2b   : > { %p712_p1 = scmp.ne.s32.totalorder %s1145_s2, %s711_s4  ;;  %p718_p10 = scmp.lt.u32.totalorder %s711_s4, %s1145_s2 }
  0x2d   : > { %p714_p4 = pnand %p712_p1, %p685_p13 }
  0x2f   : > { %p715_p6 = pneg %p714_p4 }
  0x31   : > { %p720_p3 = pnand %p718_p10, %p715_p6 }
  0x33   : > { %723 = shalt.err (!%p720_p3)
}
  0x34   : > { %s724_s26 = scalar_lea.vmem %s955_s29, 128  ;;  %p732_p12 = scmp.lt.s32.totalorder %s955_s29, %s955_s29 }
  0x35   : > { %p725_p5 = scmp.ne.s32.totalorder %s955_s29, %s724_s26  ;;  %p733_p0 = scmp.lt.s32.totalorder %s724_s26, %s724_s26 }
  0x37   : > { %p727_p7 = pnand %p725_p5, %p685_p13  ;;  %p734_p1 = por %p733_p0, %p732_p12 }
  0x39   : > { %p728_p9 = pneg %p727_p7 }
  0x3b   : > { %p735_p4 = pnand %p734_p1, %p728_p9 }
  0x3d   : > { %738 = shalt.err (!%p735_p4)
}
  0x3e   : > { %613 = dma.hbm_to_vmem [thread:$0]  (!%p951_p11), %s1145_s2, 128, %s955_s29, [#allocation7]  }
  0x3f   : > { %s46_s11 = sadd.s32 1, %s851_s16  ;;  %s57_s18 = sadd.s32 1, %s843_s14 }
  0x40   : > { %p48_p13 = scmp.ge.s32.totalorder %s46_s11, 2  ;;  %p64_p6 = scmp.ne.s32.totalorder %s843_s14, %s839_s13 }
  0x41   : > { %p65_p10 = scmp.eq.s32.totalorder %s855_s17, 0  ;;  %p624_p3 = scmp.lt.s32.totalorder %s855_s17, 2 }
  0x42   : > { %s1170_s11 = smov (%p48_p13, %s46_s11), 0  ;;  %p1019_p7 = por %p924_p2, %p64_p6 }
  0x43   : > { %p66_p5 = por %p65_p10, %p64_p6  ;;  %s50_s19 = ssub.s32 %s851_s16, %s1170_s11 }
  0x44   : > { %s1157_s27 = scalar_select %p1019_p7, 1, 0 }
  0x45   : > { %s211_s25 = sand.u32 1, %s843_s14   ;;  %p55_p9 = scmp.eq.s32.totalorder %s50_s19, 0 }
  0x46   : > { %s508_s29 = sshll.u32 %s211_s25, 3  ;;  %s509_s28 = sshll.u32 %s851_s16, 7 }
  0x47   : > { %s1028_s30 = scalar_select %p55_p9, %s843_s14, %s57_s18  }
  0x48   : > { %s1033_s6 = scalar_lea.hbm %s1143_s0, %s509_s28  ;;  %s215_s21 = scalar_lea.vmem [#allocation3], %s508_s29 }
  0x49   : > { %s224_s7 = sshll.u32 %s215_s21, 4  ;;  %p1037_p2 = pnand %p624_p3, %p66_p5  ;;  %s1041_s7 = int_to_ptr.vmem [resolvable:$true] %s224_s7 }
  0x4a   : > { %s212_s26 = scalar_lea.sflag [#allocation4], %s211_s25  ;;  %s739_s9 = scalar_lea.hbm %s1033_s6, 128 }
  0x4b   : > { %p740_p11 = scmp.ne.s32.totalorder %s1033_s6, %s739_s9  ;;  %p741_p12 = pneg %p1037_p2 }
  0x4c   : > { %s744_s19 = scalar_lea.hbm %s1143_s0, 256  ;;  %p745_p4 = scmp.lt.u32.totalorder %s1033_s6, %s1143_s0 }
  0x4d   : > { %p742_p0 = pnand %p741_p12, %p740_p11  ;;  %p746_p13 = scmp.lt.u32.totalorder %s744_s19, %s739_s9 }
  0x4e   : > { %p748_p10 = scmp.lt.u32.totalorder %s739_s9, %s1033_s6 }
  0x4f   : > { %p743_p1 = pneg %p742_p0  ;;  %p747_p6 = por %p746_p13, %p745_p4 }
  0x51   : > { %p749_p3 = por %p748_p10, %p747_p6 }
  0x53   : > { %p750_p5 = pnand %p749_p3, %p743_p1 }
  0x55   : > { %753 = shalt.err (!%p750_p5)
}
  0x56   : > { %s754_s25 = scalar_lea.vmem %s1041_s7, 128  ;;  %s861_s4 = smov [#allocation3]  }
  0x57   : > { %p755_p9 = scmp.ne.s32.totalorder %s1041_s7, %s754_s25  ;;  %s759_s5 = sshll.u32 %s861_s4, 4  ;;  %s760_s5 = int_to_ptr.vmem [resolvable:$false] %s759_s5 }
  0x58   : > { %s761_s21 = scalar_lea.vmem %s760_s5, 256  ;;  %p762_p7 = scmp.lt.s32.totalorder %s1041_s7, %s760_s5 }
  0x59   : > { %p757_p11 = pnand %p755_p9, %p741_p12  ;;  %p763_p4 = scmp.lt.s32.totalorder %s761_s21, %s754_s25 }
  0x5b   : > { %p758_p0 = pneg %p757_p11  ;;  %p764_p13 = por %p763_p4, %p762_p7 }
  0x5d   : > { %p765_p6 = pnand %p764_p13, %p758_p0 }
  0x5f   : > { %768 = shalt.err (!%p765_p6)
}
  0x60   : > { %617 = dma.hbm_to_vmem [thread:$0]  (!%p1037_p2), %s1033_s6, 128, %s1041_s7, %s212_s26  }
  0x61   : > { %233 = sbr.rel (%p940_p8) target bundleno = 371 (0x173), region = 32  ;;  %s1071_s9 = sand.u32 (!%p940_p8), 1, %s839_s13  }
  0x62   : > { %s511_s10 = sshll.u32 (!%p940_p8), %s1071_s9, 3  ;;  %s236_s18 = scalar_lea.sflag (!%p940_p8), [#allocation4], %s1071_s9 }
  0x63   : > { %s1077_s19 = scalar_lea.vmem (!%p940_p8), [#allocation3], %s511_s10  ;;  %p1159_p7 = scmp.ne.s32.totalorder (!%p940_p8), %s1153_s22, 0 }
  0x68   : > { %822 = dma.done.wait (%p1159_p7), %s236_s18, 128  }
  0x69   : > { %824 = vsyncadd (%p1159_p7), %s236_s18, 4294967168  ;;  %p1160_p2 = scmp.ne.s32.totalorder %s1151_s20, 0 }
  0x6b   : > { %826 = dma.done.wait (%p1160_p2), [#allocation7], 2176  }
  0x6c   : > { %828 = vsyncadd (%p1160_p2), [#allocation7], 4294965120  ;;  %v862_v0 = vmov 0.0|0.0   ;;  %vm863_vm0 = vmmov 0   ;;  %v864_v1 = vmov 0.0   ;;  %v279_v2 = vld [vmem:[#allocation6] sm:$0xff] }
  0x6d   : > { %571 = vmatprep.subr.bf16.mxu0 %v862_v0  ;;  %568 = vmatprep.mubr.msk.f32.mxu0 %vm863_vm0, %v864_v1  ;;  %v280_v3 = vld [vmem:[#allocation6 + $0x8] sm:$0xff]  ;;  %v281_v4 = vld [vmem:[#allocation6 + $0x10] sm:$0xff]  ;;  %v282_v6 = vld [vmem:[#allocation6 + $0x18] sm:$0xff]  ;;  %s516_s20 = sshll.u32 %s847_s15, 7  ;;  %s269_s22 = scalar_lea.vmem [#allocation9], %s511_s10 }
  0x6e   : > { %v572_v5 = vpack.c.bf16 %v280_v3, %v279_v2  ;;  %v575_v7 = vpack.c.bf16 %v282_v6, %v281_v4  ;;  %v283_v8 = vld [vmem:[#allocation6 + $0x20] sm:$0xff]  ;;  %v284_v9 = vld [vmem:[#allocation6 + $0x28] sm:$0xff]  ;;  %v285_v11 = vld [vmem:[#allocation6 + $0x30] sm:$0xff]  ;;  %s388_s24 = sshll.u32 %s269_s22, 4  ;;  %s1094_s8 = scalar_lea.hbm %s1146_s3, %s516_s20  ;;  %s1096_s24 = int_to_ptr.vmem [resolvable:$true] %s388_s24 }
  0x6f   : > { %v578_v10 = vpack.c.bf16 %v284_v9, %v283_v8  ;;  %v286_v12 = vld [vmem:[#allocation6 + $0x38] sm:$0xff]  ;;  %v287_v14 = vld [vmem:[#allocation6 + $0x40] sm:$0xff]  ;;  %v288_v15 = vld [vmem:[#allocation6 + $0x48] sm:$0xff]  ;;  %s373_s26 = scalar_lea.sflag [#allocation5], %s1071_s9  ;;  %s769_s29 = scalar_lea.vmem %s1096_s24, 128 }
  0x70   : > { %573 = vmatpush3.bf16.msra.mxu0 %v572_v5  ;;  %v581_v13 = vpack.c.bf16 %v286_v12, %v285_v11  ;;  %v584_v16 = vpack.c.bf16 %v288_v15, %v287_v14  ;;  %v289_v17 = vld [vmem:[#allocation6 + $0x50] sm:$0xff]  ;;  %v290_v18 = vld [vmem:[#allocation6 + $0x58] sm:$0xff]  ;;  %v291_v20 = vld [vmem:[#allocation6 + $0x60] sm:$0xff]  ;;  %p770_p8 = scmp.ne.s32.totalorder %s1096_s24, %s769_s29  ;;  %p1161_p12 = scmp.ne.s32.totalorder %s1157_s27, 0 }
  0x71   : > { %574 = vmatprep.subr.bf16.mxu0 %v862_v0  ;;  %v587_v19 = vpack.c.bf16 %v290_v18, %v289_v17  ;;  %v292_v21 = vld [vmem:[#allocation6 + $0x68] sm:$0xff]  ;;  %v293_v23 = vld [vmem:[#allocation6 + $0x70] sm:$0xff]  ;;  %v294_v24 = vld [vmem:[#allocation6 + $0x78] sm:$0xff]  ;;  %s865_s15 = smov [#allocation9]  }
  0x72   : > { %v590_v22 = vpack.c.bf16 %v292_v21, %v291_v20  ;;  %v593_v25 = vpack.c.bf16 %v294_v24, %v293_v23  ;;  %v278_v26 = vld [vmem:[%s1077_s19] sm:$0xff]  ;;  %v275_v27 = vld [vmem:[#allocation8] sm:$0xff]  ;;  %p771_p1 = pnand %p770_p8, %p1161_p12  ;;  %s773_s28 = sshll.u32 %s865_s15, 4  ;;  %s774_s28 = int_to_ptr.vmem [resolvable:$false] %s773_s28 }
  0x73   : > { %s775_s25 = scalar_lea.vmem %s774_s28, 256  ;;  %p776_p3 = scmp.lt.s32.totalorder %s1096_s24, %s774_s28 }
  0x74   : > { %576 = vmatpush3.bf16.msra.mxu0 %v575_v7  ;;  %p772_p10 = pneg %p771_p1  ;;  %p777_p5 = scmp.lt.s32.totalorder %s775_s25, %s769_s29 }
  0x75   : > { %577 = vmatprep.subr.bf16.mxu0 %v862_v0 }
  0x76   : > { %p778_p9 = por %p777_p5, %p776_p3 }
  0x78   : > { %579 = vmatpush3.bf16.msra.mxu0 %v578_v10  ;;  %p779_p11 = pnand %p778_p9, %p772_p10 }
  0x79   : > { %580 = vmatprep.subr.bf16.mxu0 %v862_v0 }
  0x7c   : > { %582 = vmatpush3.bf16.msra.mxu0 %v581_v13 }
  0x7d   : > { %583 = vmatprep.subr.bf16.mxu0 %v862_v0 }
  0x80   : > { %585 = vmatpush3.bf16.msra.mxu0 %v584_v16 }
  0x81   : > { %586 = vmatprep.subr.bf16.mxu0 %v862_v0 }
  0x84   : > { %588 = vmatpush3.bf16.msra.mxu0 %v587_v19 }
  0x85   : > { %589 = vmatprep.subr.bf16.mxu0 %v862_v0 }
  0x88   : > { %591 = vmatpush3.bf16.msra.mxu0 %v590_v22 }
  0x89   : > { %592 = vmatprep.subr.bf16.mxu0 %v862_v0 }
  0x8c   : > { %594 = vmatpush3.bf16.msra.mxu0 %v593_v25 }
  0x8f   : > { %569 = vmatmul.mubr.f32.vlgmr.msra.gmra.mrb[0].mxu0 %v278_v26 }
 0x162   : > { %v361_v28 = vpop.f32.mrb[0].mxu0 }
 0x163   : > { %v365_v29 = vadd.f32 %v361_v28, %v275_v27  ;;  %v570_v30 = vpop.f32.mrb[1].mxu0 }
 0x165   : > { %371 = vst [vmem:[%s269_s22] sm:$0xff] %v365_v29 }
 0x166   : > { %782 = shalt.err (!%p779_p11)
}
 0x167   : > { %s783_s4 = scalar_lea.hbm %s1094_s8, 128  ;;  %s787_s9 = scalar_lea.hbm %s1146_s3, 256 }
 0x168   : > { %p784_p0 = scmp.ne.s32.totalorder %s1094_s8, %s783_s4  ;;  %p788_p6 = scmp.lt.u32.totalorder %s1094_s8, %s1146_s3 }
 0x169   : > { %p789_p7 = scmp.lt.u32.totalorder %s787_s9, %s783_s4  ;;  %p791_p8 = scmp.lt.u32.totalorder %s783_s4, %s1094_s8 }
 0x16a   : > { %p785_p4 = pnand %p784_p0, %p1161_p12 }
 0x16b   : > { %p790_p2 = por %p789_p7, %p788_p6 }
 0x16c   : > { %p786_p13 = pneg %p785_p4 }
 0x16d   : > { %p792_p1 = por %p791_p8, %p790_p2 }
 0x16f   : > { %p793_p10 = pnand %p792_p1, %p786_p13 }
 0x171   : > { %796 = shalt.err (!%p793_p10)
}
 0x172   : > { %605 = dma.vmem_to_hbm [thread:$0]  (%p1161_p12), %s1096_s24, 128, %s1094_s8, %s373_s26  }
 0x173 PF: > { %s400_s19 = sand.u32 1, %s835_s12   ;;  %p1162_p3 = scmp.ne.s32.totalorder %s1154_s23, 0 }
 0x174   : > { %p1163_p5 = scmp.ge.s32.totalorder %s855_s17, 2  ;;  %s401_s20 = scalar_lea.sflag [#allocation5], %s400_s19 }
 0x176   : > { %p619_p9 = pnand %p1163_p5, %p1162_p3 }
 0x178   : > { %830 = dma.done.wait (!%p619_p9), %s401_s20, 128  }
 0x179   : > { %832 = vsyncadd (!%p619_p9), %s401_s20, 4294967168  ;;  %s20_s17 = sadd.s32 1, %s855_s17   ;;  %s1164_s12 = smov %s839_s13 }
 0x17a   : > { %p17_p11 = scmp.ge.s32.totalorder %s20_s17, 4   ;;  %s1165_s13 = smov %s843_s14 }
 0x17b   : > { %s1166_s14 = smov %s1028_s30  ;;  %s1167_s15 = smov %s851_s16 }
 0x17c   : > { %s1168_s16 = smov %s1170_s11  ;;  %19 = sbr.rel (!%p17_p11) target bundleno = 7 (0x7), region = 95 }
 0x183   :  { %406 = vsyncpa [#allocation4], 1 }
 0x184   :  { %408 = vsyncpa [#allocation4 + $0x1], 1 }
 0x185   :  { %409 = vsyncpa [#allocation7], 1 }
 0x186   :  { %410 = vsyncpa [#allocation5], 1 }
 0x187   :  { %412 = vsyncpa [#allocation5 + $0x1], 1 }

</bundles_post_ra>
